<compile_context>
chip_gen: v7x
topology: tpu7x:2x2x1
jax: 0.10.0
libtpu: 0.0.40
codegen_flags: <defaults>
</compile_context>

<pallas_src>
import functools

import jax
import jax.numpy as jnp
from jax.experimental import pallas as pl
from jax.experimental.pallas import tpu as pltpu


def _ffn_kernel(x_ref, w1_ref, w2_ref, gamma_ref, beta_ref, o_ref, acc_ref, *, eps):
    # x_ref:      (tm, d_model)        input row tile (native dtype)
    # w1_ref:     (d_model, tf)        slice of W1 along d_ff
    # w2_ref:     (tf, d_model)        slice of W2 along d_ff
    # gamma/beta: (1, d_model)
    # acc_ref:    (tm, d_model) f32    residual + FFN accumulator
    k = pl.program_id(1)

    @pl.when(k == 0)
    def _init():
        # Seed the accumulator with the residual (f32).
        acc_ref[...] = x_ref[...].astype(jnp.float32)

    # Partial FFN: relu(x @ W1[:, k]) @ W2[k, :], accumulated in f32.
    h = jnp.dot(x_ref[...], w1_ref[...], preferred_element_type=jnp.float32)
    h = jnp.maximum(h, 0.0).astype(w2_ref.dtype)
    acc_ref[...] += jnp.dot(h, w2_ref[...], preferred_element_type=jnp.float32)

    @pl.when(k == pl.num_programs(1) - 1)
    def _finalize():
        # LayerNorm over d_model in f32 (matches nn.LayerNorm default eps).
        y = acc_ref[...]
        mean = jnp.mean(y, axis=-1, keepdims=True)
        centered = y - mean
        var = jnp.mean(centered * centered, axis=-1, keepdims=True)
        y_norm = centered * jax.lax.rsqrt(var + eps)
        out = (y_norm * gamma_ref[...].astype(jnp.float32)
               + beta_ref[...].astype(jnp.float32))
        o_ref[...] = out.astype(o_ref.dtype)


def _round_up(x, m):
    return ((x + m - 1) // m) * m


def _pick_tf(d_ff):
    # d_ff tile: small d_ff stays whole; otherwise prefer a 128-multiple
    # divisor so weight tiles are lane-aligned and VMEM stays bounded.
    if d_ff <= 512:
        return d_ff
    for cand in (512, 256, 128):
        if d_ff % cand == 0:
            return cand
    return d_ff  # fallback: full-dim block is always legal


def poswise_ffn(inputs, w1, w2, gamma, beta, *, eps=1e-5, tm=256):
    """inputs: [batch, seq_len, d_model]  ->  [batch, seq_len, d_model]"""
    b, s, d_model = inputs.shape
    d_ff = w1.shape[1]
    rows = b * s

    # Row tile: clamp for tiny inputs, keep a multiple of 8 sublanes.
    tm_eff = min(tm, _round_up(rows, 8))
    rows_padded = _round_up(rows, tm_eff)

    tf = _pick_tf(d_ff)
    n_k = d_ff // tf

    x2d = inputs.reshape(rows, d_model)
    if rows_padded != rows:
        # Zero-padded rows are throwaway compute; LayerNorm of zeros is finite.
        x2d = jnp.pad(x2d, ((0, rows_padded - rows), (0, 0)))
    gamma2d = gamma.reshape(1, d_model)
    beta2d = beta.reshape(1, d_model)

    # VMEM budget for the chosen tiles (double-buffered streams + scratch),
    # with headroom, capped below the smallest per-TC VMEM (v7x: 64 MiB).
    x_bytes = jnp.dtype(inputs.dtype).itemsize
    w_bytes = jnp.dtype(w1.dtype).itemsize
    vmem_need = (
        2 * tm_eff * d_model * x_bytes            # x tile, double-buffered
        + 2 * tm_eff * d_model * x_bytes          # out tile, double-buffered
        + 2 * 2 * d_model * tf * w_bytes          # W1 + W2 tiles, double-buffered
        + tm_eff * d_model * 4                    # f32 accumulator
        + tm_eff * tf * 4                         # intermediate h
        + 4 * d_model * 4                         # gamma/beta
    )
    vmem_limit = int(min(max(int(vmem_need * 1.5) + (2 << 20), 16 << 20), 48 << 20))

    kernel = functools.partial(_ffn_kernel, eps=eps)

    out2d = pl.pallas_call(
        kernel,
        out_shape=jax.ShapeDtypeStruct((rows_padded, d_model), inputs.dtype),
        grid_spec=pltpu.PrefetchScalarGridSpec(
            num_scalar_prefetch=0,
            grid=(rows_padded // tm_eff, n_k),
            in_specs=[
                pl.BlockSpec((tm_eff, d_model), lambda i, k: (i, 0)),   # x row-tile
                pl.BlockSpec((d_model, tf), lambda i, k: (0, k)),       # W1 d_ff-slice
                pl.BlockSpec((tf, d_model), lambda i, k: (k, 0)),       # W2 d_ff-slice
                pl.BlockSpec((1, d_model), lambda i, k: (0, 0)),        # gamma
                pl.BlockSpec((1, d_model), lambda i, k: (0, 0)),        # beta
            ],
            out_specs=pl.BlockSpec((tm_eff, d_model), lambda i, k: (i, 0)),
            scratch_shapes=[pltpu.VMEM((tm_eff, d_model), jnp.float32)],
        ),
        compiler_params=pltpu.CompilerParams(
            dimension_semantics=("parallel", "arbitrary"),
            vmem_limit_bytes=vmem_limit,
        ),
    )(x2d, w1, w2, gamma2d, beta2d)

    return out2d[:rows].reshape(b, s, d_model)


def _reference(x, w1, w2, gamma, beta, eps=1e-5):
    h = jnp.maximum(jnp.einsum("bsd,df->bsf", x, w1), 0.0)
    y = jnp.einsum("bsf,fd->bsd", h, w2) + x
    mean = jnp.mean(y, axis=-1, keepdims=True)
    var = jnp.mean((y - mean) ** 2, axis=-1, keepdims=True)
    return (y - mean) * jax.lax.rsqrt(var + eps) * gamma + beta


if __name__ == "__main__":
    # Shapes implied by the module: [batch_size, seq_len, d_model]
    batch, seq_len, d_model, d_ff = 2, 8, 32, 64

    key = jax.random.PRNGKey(0)
    k_x, k_w1, k_w2, k_x2 = jax.random.split(key, 4)

    x = jax.random.normal(k_x, (batch, seq_len, d_model), dtype=jnp.float32)

    # nn.Linear(d_model, d_ff, bias=False) / nn.Linear(d_ff, d_model, bias=False)
    # stored as (in, out) so the kernel computes x @ W (== x @ W_pt.T), and
    # nn.LayerNorm(d_model) defaults (weight=1, bias=0, eps=1e-5).
    w1 = jax.random.normal(k_w1, (d_model, d_ff), dtype=jnp.float32) * 0.05
    w2 = jax.random.normal(k_w2, (d_ff, d_model), dtype=jnp.float32) * 0.05
    gamma = jnp.ones((d_model,), dtype=jnp.float32)
    beta = jnp.zeros((d_model,), dtype=jnp.float32)

    out = poswise_ffn(x, w1, w2, gamma, beta)
    out = jax.block_until_ready(out)

    ref = _reference(x, w1, w2, gamma, beta)
    assert out.shape == (batch, seq_len, d_model)
    assert jnp.allclose(out, ref, atol=1e-5, rtol=1e-5)

    # Second case: row count not a multiple of the tile -> exercises padding path.
    x2 = jax.random.normal(k_x2, (3, 5, d_model), dtype=jnp.float32)
    out2 = jax.block_until_ready(poswise_ffn(x2, w1, w2, gamma, beta))
    ref2 = _reference(x2, w1, w2, gamma, beta)
    assert out2.shape == (3, 5, d_model)
    assert jnp.allclose(out2, ref2, atol=1e-5, rtol=1e-5)

    print("KERNEL_OK")
</pallas_src>

<mosaic_0001>
module attributes {stable_mosaic.version = 11 : i64} {
  func.func @_ffn_kernel(%arg0: i32, %arg1: i32, %arg2: memref<16x32xf32, #tpu.memory_space<vmem>>, %arg3: memref<32x64xf32, #tpu.memory_space<vmem>>, %arg4: memref<64x32xf32, #tpu.memory_space<vmem>>, %arg5: memref<1x32xf32, #tpu.memory_space<vmem>>, %arg6: memref<1x32xf32, #tpu.memory_space<vmem>>, %arg7: memref<16x32xf32, #tpu.memory_space<vmem>>, %arg8: memref<16x32xf32, #tpu.memory_space<vmem>>) attributes {dimension_semantics = [#tpu.dimension_semantics<parallel>, #tpu.dimension_semantics<arbitrary>], iteration_bounds = array<i64: 1, 1>, scalar_prefetch = 0 : i64, scratch_operands = 1 : i64, tpu.core_type = #tpu.core_type<tc>, window_params = [{transform_indices = @transform_0, window_bounds = array<i64: 16, 32>}, {transform_indices = @transform_1, window_bounds = array<i64: 32, 64>}, {transform_indices = @transform_2, window_bounds = array<i64: 64, 32>}, {pipeline_mode = #tpu.pipeline_mode<synchronous>, transform_indices = @transform_3, window_bounds = array<i64: 1, 32>}, {pipeline_mode = #tpu.pipeline_mode<synchronous>, transform_indices = @transform_4, window_bounds = array<i64: 1, 32>}, {transform_indices = @transform_5, window_bounds = array<i64: 16, 32>}]} {
    %c0_i32 = arith.constant 0 : i32
    %0 = arith.cmpi eq, %arg1, %c0_i32 : i32
    %1 = arith.extui %0 : i1 to i32
    %c0_i32_0 = arith.constant 0 : i32
    %2 = arith.cmpi ne, %1, %c0_i32_0 : i32
    scf.if %2 {
      %c0_14 = arith.constant 0 : index
      %c0_15 = arith.constant 0 : index
      %16 = vector.load %arg2[%c0_14, %c0_15] : memref<16x32xf32, #tpu.memory_space<vmem>>, vector<16x32xf32>
      %c0_16 = arith.constant 0 : index
      %c0_17 = arith.constant 0 : index
      %17 = vector.load %arg8[%c0_16, %c0_17] : memref<16x32xf32, #tpu.memory_space<vmem>>, vector<16x32xf32>
      tpu.vector_store %arg8[%c0_16, %c0_17], %16 {strides = array<i32>} : memref<16x32xf32, #tpu.memory_space<vmem>>, vector<16x32xf32>,
    } else {
    }
    %c0 = arith.constant 0 : index
    %c0_1 = arith.constant 0 : index
    %3 = vector.load %arg2[%c0, %c0_1] : memref<16x32xf32, #tpu.memory_space<vmem>>, vector<16x32xf32>
    %c0_2 = arith.constant 0 : index
    %c0_3 = arith.constant 0 : index
    %4 = vector.load %arg3[%c0_2, %c0_3] : memref<32x64xf32, #tpu.memory_space<vmem>>, vector<32x64xf32>
    %cst = arith.constant dense<0.000000e+00> : vector<16x64xf32>
    %5 = tpu.matmul %3, %4, %cst {dimension_numbers = #tpu.dot_dimension_numbers<[1], [0], [0], [1], [0, 0, 1, 1], [], []>} : vector<16x32xf32>, vector<32x64xf32>, vector<16x64xf32> -> vector<16x64xf32>
    %cst_4 = arith.constant 0.000000e+00 : f32
    %6 = vector.broadcast %cst_4 : f32 to vector<16x64xf32>
    %7 = arith.maximumf %5, %6 : vector<16x64xf32>
    %c0_5 = arith.constant 0 : index
    %c0_6 = arith.constant 0 : index
    %8 = vector.load %arg8[%c0_5, %c0_6] : memref<16x32xf32, #tpu.memory_space<vmem>>, vector<16x32xf32>
    %c0_7 = arith.constant 0 : index
    %c0_8 = arith.constant 0 : index
    %9 = vector.load %arg4[%c0_7, %c0_8] : memref<64x32xf32, #tpu.memory_space<vmem>>, vector<64x32xf32>
    %cst_9 = arith.constant dense<0.000000e+00> : vector<16x32xf32>
    %10 = tpu.matmul %7, %9, %cst_9 {dimension_numbers = #tpu.dot_dimension_numbers<[1], [0], [0], [1], [0, 0, 1, 1], [], []>} : vector<16x64xf32>, vector<64x32xf32>, vector<16x32xf32> -> vector<16x32xf32>
    %11 = arith.addf %8, %10 : vector<16x32xf32>
    %c0_10 = arith.constant 0 : index
    %c0_11 = arith.constant 0 : index
    %12 = vector.load %arg8[%c0_10, %c0_11] : memref<16x32xf32, #tpu.memory_space<vmem>>, vector<16x32xf32>
    tpu.vector_store %arg8[%c0_10, %c0_11], %11 {strides = array<i32>} : memref<16x32xf32, #tpu.memory_space<vmem>>, vector<16x32xf32>,
    %c0_i32_12 = arith.constant 0 : i32
    %13 = arith.cmpi eq, %arg1, %c0_i32_12 : i32
    %14 = arith.extui %13 : i1 to i32
    %c0_i32_13 = arith.constant 0 : i32
    %15 = arith.cmpi ne, %14, %c0_i32_13 : i32
    scf.if %15 {
      %c0_14 = arith.constant 0 : index
      %c0_15 = arith.constant 0 : index
      %16 = vector.load %arg8[%c0_14, %c0_15] : memref<16x32xf32, #tpu.memory_space<vmem>>, vector<16x32xf32>
      %cst_16 = arith.constant dense<0.000000e+00> : vector<16xf32>
      %17 = vector.multi_reduction <add>, %16, %cst_16 [1] : vector<16x32xf32> to vector<16xf32>
      %18 = vector.shape_cast %17 : vector<16xf32> to vector<16x1xf32>
      %cst_17 = arith.constant 3.200000e+01 : f32
      %19 = vector.broadcast %cst_17 : f32 to vector<16x1xf32>
      %20 = arith.divf %18, %19 : vector<16x1xf32>
      %21 = vector.broadcast %20 : vector<16x1xf32> to vector<16x32xf32>
      %22 = arith.subf %16, %21 : vector<16x32xf32>
      %23 = arith.mulf %22, %22 : vector<16x32xf32>
      %cst_18 = arith.constant dense<0.000000e+00> : vector<16xf32>
      %24 = vector.multi_reduction <add>, %23, %cst_18 [1] : vector<16x32xf32> to vector<16xf32>
      %25 = vector.shape_cast %24 : vector<16xf32> to vector<16x1xf32>
      %cst_19 = arith.constant 3.200000e+01 : f32
      %26 = vector.broadcast %cst_19 : f32 to vector<16x1xf32>
      %27 = arith.divf %25, %26 : vector<16x1xf32>
      %cst_20 = arith.constant 9.99999974E-6 : f32
      %28 = vector.broadcast %cst_20 : f32 to vector<16x1xf32>
      %29 = arith.addf %27, %28 : vector<16x1xf32>
      %30 = math.rsqrt %29 : vector<16x1xf32>
      %31 = vector.broadcast %30 : vector<16x1xf32> to vector<16x32xf32>
      %32 = arith.mulf %22, %31 : vector<16x32xf32>
      %c0_21 = arith.constant 0 : index
      %c0_22 = arith.constant 0 : index
      %33 = vector.load %arg5[%c0_21, %c0_22] : memref<1x32xf32, #tpu.memory_space<vmem>>, vector<1x32xf32>
      %34 = vector.broadcast %33 : vector<1x32xf32> to vector<16x32xf32>
      %35 = arith.mulf %32, %34 : vector<16x32xf32>
      %c0_23 = arith.constant 0 : index
      %c0_24 = arith.constant 0 : index
      %36 = vector.load %arg6[%c0_23, %c0_24] : memref<1x32xf32, #tpu.memory_space<vmem>>, vector<1x32xf32>
      %37 = vector.broadcast %36 : vector<1x32xf32> to vector<16x32xf32>
      %38 = arith.addf %35, %37 : vector<16x32xf32>
      %c0_25 = arith.constant 0 : index
      %c0_26 = arith.constant 0 : index
      %39 = vector.load %arg7[%c0_25, %c0_26] : memref<16x32xf32, #tpu.memory_space<vmem>>, vector<16x32xf32>
      tpu.vector_store %arg7[%c0_25, %c0_26], %38 {strides = array<i32>} : memref<16x32xf32, #tpu.memory_space<vmem>>, vector<16x32xf32>,
    } else {
    }
    return
  }
  func.func @transform_0(%arg0: i32, %arg1: i32) -> (i32, i32) {
    %c0_i32 = arith.constant 0 : i32
    %c0_i32_0 = arith.constant 0 : i32
    return %arg0, %c0_i32 : i32, i32
  }
  func.func @transform_1(%arg0: i32, %arg1: i32) -> (i32, i32) {
    %c0_i32 = arith.constant 0 : i32
    %c0_i32_0 = arith.constant 0 : i32
    return %c0_i32, %arg1 : i32, i32
  }
  func.func @transform_2(%arg0: i32, %arg1: i32) -> (i32, i32) {
    %c0_i32 = arith.constant 0 : i32
    %c0_i32_0 = arith.constant 0 : i32
    return %arg1, %c0_i32 : i32, i32
  }
  func.func @transform_3(%arg0: i32, %arg1: i32) -> (i32, i32) {
    %c0_i32 = arith.constant 0 : i32
    %c0_i32_0 = arith.constant 0 : i32
    %c0_i32_1 = arith.constant 0 : i32
    return %c0_i32, %c0_i32_0 : i32, i32
  }
  func.func @transform_4(%arg0: i32, %arg1: i32) -> (i32, i32) {
    %c0_i32 = arith.constant 0 : i32
    %c0_i32_0 = arith.constant 0 : i32
    %c0_i32_1 = arith.constant 0 : i32
    return %c0_i32, %c0_i32_0 : i32, i32
  }
  func.func @transform_5(%arg0: i32, %arg1: i32) -> (i32, i32) {
    %c0_i32 = arith.constant 0 : i32
    %c0_i32_0 = arith.constant 0 : i32
    return %arg0, %c0_i32 : i32, i32
  }
}

</mosaic_0001>

<bundles_post_ra>
// kernel: tpu_custom_call.1
= control target key start
LH: loop header
LB: loop body
LE: loop exit
PB: predicated region body
PF: predicated region fallthrough
CT: control target
= control target key end

     0   :  { %vm27_vm0 = vcmask 261120   ;;  %s496_s0 = inlined_call_operand.vmem [shape: f32[16,32], index: 0, kind: input, shape index: {}]   ;;  %s497_s1 = inlined_call_operand.vmem [shape: f32[32,64], index: 1, kind: input, shape index: {}]   ;;  %s498_s2 = inlined_call_operand.vmem [shape: f32[64,32], index: 2, kind: input, shape index: {}]   ;;  %s499_s3 = inlined_call_operand.vmem [shape: f32[1,32], index: 3, kind: input, shape index: {}]   ;;  %s500_s4 = inlined_call_operand.vmem [shape: f32[1,32], index: 4, kind: input, shape index: {}]   ;;  %s501_s5 = inlined_call_operand.hbm [shape: f32[16,32], index: 5, kind: output, shape index: {}]  }
   0x1   :  { %v32_v0 = vld [vmem:[%s497_s1] sm:$0xff]  ;;  %v33_v1 = vld [vmem:[%s497_s1 + $0x8] sm:$0xff]  ;;  %v34_v2 = vld [vmem:[%s497_s1 + $0x10] sm:$0xff] }
   0x2   :  { %v336_v3 = vpack.c.bf16 %v33_v1, %v32_v0  ;;  %v35_v4 = vld [vmem:[%s497_s1 + $0x18] sm:$0xff]  ;;  %v30_v5 = vld [vmem:[%s496_s0] sm:$0xff]  ;;  %v31_v6 = vld [vmem:[%s496_s0 + $0x8] sm:$0xff] }
   0x3   :  { %v340_v7 = vpack.c.bf16 %v35_v4, %v34_v2  ;;  %314 = vmatprep.mubr.msk.f32.mxu0 %vm27_vm0, %v30_v5  ;;  %v122_v8 = vld [vmem:[%s498_s2] sm:$0xff]  ;;  %v123_v9 = vld [vmem:[%s498_s2 + $0x8] sm:$0xff]  ;;  %v124_v10 = vld [vmem:[%s498_s2 + $0x10] sm:$0xff]  ;;  %29 = vst.msk [vmem:[#allocation2 + $0x8] sm:$0xff] %vm27_vm0, %v31_v6 }
   0x4   :  { %28 = vst.msk [vmem:[#allocation2] sm:$0xff] %vm27_vm0, %v30_v5  ;;  %337 = vmatprep.subr.bf16.mxu0 %v336_v3  ;;  %v344_v11 = vpack.c.bf16 %v123_v9, %v122_v8  ;;  %v125_v12 = vld [vmem:[%s498_s2 + $0x18] sm:$0xff]  ;;  %v126_v14 = vld [vmem:[%s498_s2 + $0x20] sm:$0xff]  ;;  %v127_v15 = vld [vmem:[%s498_s2 + $0x28] sm:$0xff] }
   0x5   :  { %339 = vmatpush3.bf16.msra.mxu0 %v336_v3  ;;  %v348_v13 = vpack.c.bf16 %v125_v12, %v124_v10 }
   0x6   :  { %10 = vsyncpa [#allocation4], 0  ;;  %341 = vmatprep.subr.bf16.mxu0 %v340_v7  ;;  %345 = vmatprep.subr.bf16.mxu1 %v344_v11  ;;  %v352_v16 = vpack.c.bf16 %v127_v15, %v126_v14  ;;  %v128_v17 = vld [vmem:[%s498_s2 + $0x30] sm:$0xff]  ;;  %v129_v18 = vld [vmem:[%s498_s2 + $0x38] sm:$0xff]  ;;  %vm130_vm1 = vcmask 523264   ;;  %s391_s22 = smov [#allocation3]  }
   0x7   :  { %347 = vmatpush3.bf16.msra.mxu1 %v344_v11  ;;  %v356_v19 = vpack.c.bf16 %v129_v18, %v128_v17  ;;  %v288_v51 = vld [vmem:[%s499_s3] ss:$0 sm:$0xff]  ;;  %s273_s23 = sshll.u32 %s391_s22, 4  ;;  %s274_s23 = int_to_ptr.vmem [resolvable:$true] %s273_s23 }
   0x8   :  { %349 = vmatprep.subr.bf16.mxu1 %v348_v13  ;;  %v289_v53 = vld [vmem:[%s500_s4] ss:$0 sm:$0xff]  ;;  %s367_s24 = scalar_lea.vmem %s274_s23, 256  ;;  %p372_p1 = scmp.lt.s32.totalorder %s274_s23, %s274_s23 }
   0x9   :  { %343 = vmatpush3.bf16.msra.mxu0 %v340_v7  ;;  %p368_p0 = scmp.ne.s32.totalorder %s274_s23, %s367_s24  ;;  %p373_p2 = scmp.lt.s32.totalorder %s367_s24, %s367_s24 }
   0xa   :  { %v121_v24 = vld [vmem:[#allocation2 + $0x8] sm:$0xff] }
   0xb   :  { %351 = vmatpush3.bf16.msra.mxu1 %v348_v13  ;;  %v120_v25 = vld [vmem:[#allocation2] sm:$0xff]  ;;  %p374_p3 = por %p373_p2, %p372_p1 }
   0xc   :  { %315 = vmatmul.mubr.msk.f32.vlgmr.msra.gmra.mrb[0].mxu0 %vm27_vm0, %v31_v6  ;;  %353 = vmatprep.subr.bf16.mxu1 %v352_v16 }
   0xd   :  { %p375_p4 = pnand %p374_p3, %p368_p0 }
   0xf   :  { %355 = vmatpush3.bf16.msra.mxu1 %v352_v16 }
  0x10   :  { %357 = vmatprep.subr.bf16.mxu1 %v356_v19 }
  0x13   :  { %359 = vmatpush3.bf16.msra.mxu1 %v356_v19 }
  0xdf   :  { %v316_v20 = vpop.f32.mrb[0].mxu0 }
  0xe0   :  { %v109_v21 = vpop.f32.mrb[1].mxu0  ;;  %v119_v23 = vmax.f32 %v316_v20, 0.0 }
  0xe1   :  { %v118_v22 = vmax.f32 %v109_v21, 0.0 }
  0xe3   :  { %333 = vmatprep.mubr.msk.f32.mxu1 %vm130_vm1, %v118_v22 }
  0xe4   :  { %334 = vmatmul.mubr.msk.f32.vlgmr.msra.gmra.mrb[0].mxu1 %vm130_vm1, %v119_v23 }
 0x1b7   :  { %v335_v26 = vpop.f32.mrb[0].mxu1 }
 0x1b8   :  { %v213_v27 = vadd.f32 %v335_v26, %v121_v24  ;;  %v203_v28 = vpop.f32.mrb[1].mxu1 }
 0x1b9   :  { %v212_v29 = vadd.f32 %v203_v28, %v120_v25 }
 0x1ba   :  { %215 = vst.msk [vmem:[#allocation2 + $0x8] sm:$0xff] %vm27_vm0, %v213_v27 }
 0x1bb   :  { %214 = vst.msk [vmem:[#allocation2] sm:$0xff] %vm27_vm0, %v212_v29 }
 0x1c1   :  { %v220_v32 = vld [vmem:[#allocation2 + $0x8] sm:$0xff] }
 0x1c2   :  { %v219_v30 = vld [vmem:[#allocation2] sm:$0xff]  ;;  %v224_v33 = vsel %vm27_vm0, %v220_v32, 0.0 }
 0x1c3   :  { %v221_v31 = vsel %vm27_vm0, %v219_v30, 0.0 }
 0x1c4   :  { %222 = vadd.xlane.f32.xlu0 %v221_v31 }
 0x1c8   :  { %225 = vadd.xlane.f32.xlu0 %v224_v33 }
 0x251   :  { %v223_v34 = vpop.xlane.xlu0 %222 }
 0x252   :  { %v228_v35 = vmul.f32 0.03125, %v223_v34 }
 0x254   :  { %v230_v36 = vsub.f32 %v219_v30, %v228_v35 }
 0x255   :  { %v226_v37 = vpop.xlane.xlu0 %225 }
 0x256   :  { %v229_v38 = vmul.f32 0.03125, %v226_v37  ;;  %v232_v39 = vmul.f32 %v230_v36, %v230_v36 }
 0x258   :  { %v231_v40 = vsub.f32 %v220_v32, %v229_v38  ;;  %v234_v41 = vsel %vm27_vm0, %v232_v39, 0.0 }
 0x259   :  { %235 = vadd.xlane.f32.xlu1 %v234_v41 }
 0x25a   :  { %v233_v42 = vmul.f32 %v231_v40, %v231_v40 }
 0x25c   :  { %v237_v43 = vsel %vm27_vm0, %v233_v42, 0.0 }
 0x25d   :  { %238 = vadd.xlane.f32.xlu1 %v237_v43 }
 0x2e6   :  { %v236_v44 = vpop.xlane.xlu1 %235 }
 0x2e7   :  { %v240_v45 = vmul.f32 0.03125, %v236_v44 }
 0x2e9   :  { %v242_v46 = vadd.f32 1e-05, %v240_v45 }
 0x2ea   :  { %v239_v47 = vpop.xlane.xlu1 %238 }
 0x2eb   :  { %363 = vrsqrt.f32 %v242_v46  ;;  %v241_v48 = vmul.f32 0.03125, %v239_v47 }
 0x2ed   :  { %v243_v49 = vadd.f32 1e-05, %v241_v48 }
 0x2ef   :  { %365 = vrsqrt.f32 %v243_v49 }
 0x2f5   :  { %v364_v50 = vpop.eup %363 }
 0x2f6   :  { %v246_v52 = vmul.f32 %v364_v50, %v230_v36 }
 0x2f8   :  { %v255_v54 = vmul.f32 %v288_v51, %v246_v52 }
 0x2f9   :  { %v366_v55 = vpop.eup %365 }
 0x2fa   :  { %v247_v56 = vmul.f32 %v366_v55, %v231_v40  ;;  %v264_v57 = vadd.f32 %v289_v53, %v255_v54 }
 0x2fc   :  { %v256_v58 = vmul.f32 %v288_v51, %v247_v56  ;;  %266 = vst.msk [vmem:[#allocation3] sm:$0xff] %vm27_vm0, %v264_v57 }
 0x2fe   :  { %v265_v59 = vadd.f32 %v289_v53, %v256_v58 }
 0x300   :  { %267 = vst.msk [vmem:[#allocation3 + $0x8] sm:$0xff] %vm27_vm0, %v265_v59 }
 0x301   :  { %378 = shalt.err (!%p375_p4)
}
 0x302   :  { %s379_s25 = scalar_lea.hbm %s501_s5, 256 }
 0x303   :  { %p380_p5 = scmp.ne.s32.totalorder %s501_s5, %s379_s25  ;;  %p383_p6 = scmp.lt.u32.totalorder %s379_s25, %s501_s5 }
 0x305   :  { %p385_p7 = pnand %p383_p6, %p380_p5 }
 0x307   :  { %388 = shalt.err (!%p385_p7)
}
 0x308   :  { %s392_s30 = smov 128   ;;  %s393_s6 = smov 8  }
 0x309   :  { %279 = dma.vmem_to_hbm [thread:$0]  %s274_s23, 256, %s501_s5, [#allocation4], %s392_s30, %s392_s30, %s393_s6  }
 0x30a   :  { %389 = dma.done.wait [#allocation4], 256  }
 0x30b   :  { %390 = vsyncadd [#allocation4], 4294967040 }
 0x30c   :  { %283 = vsyncpa [#allocation4], 1 }

</bundles_post_ra>
